<compile_context>
chip_gen: v7x
topology: tpu7x:2x2x1
jax: 0.10.0
libtpu: 0.0.40
codegen_flags: <defaults>
</compile_context>

<pallas_src>
import math
import functools

import jax
import jax.numpy as jnp
from jax import lax
from jax.experimental import pallas as pl
from jax.experimental.pallas import tpu as pltpu

_NEG = -1e30      # finite "minus infinity" for the running max
_PAD_LOGIT = -1e9  # value padded-class logits take via the spare feature column


def _round_up(x, m):
    return (x + m - 1) // m * m


def _rsqrt_normalize(v):
    # == v / max(||v||, 1e-12)  (F.normalize), expressed with rsqrt.
    ss = jnp.sum(v * v, axis=-1, keepdims=True)
    return v * lax.rsqrt(jnp.maximum(ss, 1e-24))


def _vmem_capacity_bytes():
    try:
        info = pltpu.get_tpu_info()
        cap = getattr(info, "vmem_capacity_bytes", None)
        if cap:
            return int(cap)
    except Exception:
        pass
    return 64 * 2**20  # conservative (v7x per-TensorCore)


def _aamsoftmax_kernel(x_ref, w_ref, label_ref, loss_ref, corr_ref,
                       m_scr, l_scr, t_scr,
                       *, cos_m, sin_m, th, mm, scale, inv_scale,
                       easy_margin, c_tile, w_resident):
    c = pl.program_id(1)
    num_c = pl.num_programs(1)

    @pl.when(c == 0)
    def _init():
        m_scr[...] = jnp.full_like(m_scr, _NEG)
        l_scr[...] = jnp.zeros_like(l_scr)
        t_scr[...] = jnp.zeros_like(t_scr)

    label = label_ref[...]                      # (Bt, 1) int32
    xn = x_ref[...]                             # (Bt, D_pad) bf16, pre-normalized

    if w_resident:
        start = pl.multiple_of(c * c_tile, c_tile)
        wn = w_ref[pl.ds(start, c_tile), :]     # VMEM-resident wn, sliced per tile
    else:
        wn = w_ref[...]                         # streamed (c_tile, D_pad) block

    # (Bt, Ct) = scale * cosine  (scale folded into wn by the wrapper;
    # padded classes already arrive at ~-1e9 via the spare feature column).
    s_cos = lax.dot_general(
        xn, wn, dimension_numbers=(((1,), (1,)), ((), ())),
        preferred_element_type=jnp.float32)

    col = c * c_tile + lax.broadcasted_iota(jnp.int32, s_cos.shape, 1)
    one_hot = col == label                      # (Bt, Ct) bool

    # Margin math only on the target column (per-row scalar).
    tgt_s = jnp.sum(jnp.where(one_hot, s_cos, 0.0), axis=-1, keepdims=True)
    tgt_cos = tgt_s * inv_scale
    sine = jnp.sqrt(jnp.clip(1.0 - tgt_cos * tgt_cos, 0.0, 1.0))
    phi = tgt_cos * cos_m - sine * sin_m
    if easy_margin:
        phi = jnp.where(tgt_cos > 0, phi, tgt_cos)
    else:
        phi = jnp.where(tgt_cos - th > 0, phi, tgt_cos - mm)
    tgt_logit = scale * phi                     # (Bt, 1)
    in_tile = (label >= c * c_tile) & (label < (c + 1) * c_tile)

    # Modified logits for this class tile (target column swapped for tgt_logit).
    out = jnp.where(one_hot, tgt_logit, s_cos)

    # Online-softmax accumulators.
    m_prev = m_scr[...]
    tile_max = jnp.max(out, axis=-1, keepdims=True)
    m_new = jnp.maximum(m_prev, tile_max)
    alpha = jnp.exp(m_prev - m_new)
    # TODO(synk): on v6e/v7x a bf16 exp here would double EUP throughput; kept
    # f32 to stay bit-comparable with the reference.
    p_sum = jnp.sum(jnp.exp(out - m_new), axis=-1, keepdims=True)
    l_scr[...] = alpha * l_scr[...] + p_sum
    m_scr[...] = m_new
    t_scr[...] = jnp.where(in_tile, tgt_logit, t_scr[...])

    @pl.when(c == num_c - 1)
    def _finalize():
        lse = m_scr[...] + jnp.log(l_scr[...])
        loss_ref[...] = lse - t_scr[...]                       # per-example CE
        # target logit equals the global max  <=>  top-1 correct (up to ties)
        corr_ref[...] = (t_scr[...] >= m_scr[...]).astype(jnp.float32)


def aamsoftmax_forward(x, w, label, *, margin=0.2, scale=30.0,
                       easy_margin=False, b_tile=None, c_tile=None):
    B, D = x.shape
    C, D2 = w.shape
    assert D == D2 and label.shape[0] == B

    vmem_cap = _vmem_capacity_bytes()

    # --- generation-aware tile selection -------------------------------------
    if b_tile is None:
        if B >= 256:
            b_tile = 256                       # fills the 256-wide MXU (v6e/v7x)
            if _round_up(B, b_tile) // b_tile < 2:
                b_tile = 128                   # keep >=2 tiles on the parallel
        else:                                  # axis so both v7x TCs get work
            b_tile = min(128, _round_up(B, 8))
    if c_tile is None:
        c_tile = min(2048, _round_up(C, 128))

    B_pad = _round_up(B, b_tile)
    C_pad = _round_up(C, c_tile)
    D_pad = _round_up(D, 128)
    class_pad = C_pad > C
    if class_pad and D_pad == D:
        D_pad += 128   # guarantee a spare feature column to carry the class mask

    # --- VMEM budgeting: keep w resident (HBM-read-once) when it fits --------
    w_bytes = C_pad * D_pad * 2
    x_bytes = 2 * b_tile * D_pad * 2
    inter_bytes = 6 * b_tile * c_tile * 4
    resident = (2 * w_bytes + x_bytes + inter_bytes) <= int(0.6 * vmem_cap)
    depth = 2
    if not resident:
        if (3 * c_tile * D_pad * 2 + x_bytes + inter_bytes) <= int(0.6 * vmem_cap):
            depth = 3                           # deepen the dominant-stream pipe
    need = (x_bytes + inter_bytes + (1 << 20)
            + (2 * w_bytes if resident else depth * c_tile * D_pad * 2))
    vmem_limit = int(min(0.9 * vmem_cap, max(2 * need, 32 * 2**20)))

    # --- wrapper-side preprocessing (done ONCE, reused by every grid step) ---
    # x: normalize, pad, set the mask-carrier column to 1, cast to bf16.
    xn = _rsqrt_normalize(x.astype(jnp.float32))
    xn = jnp.pad(xn, ((0, B_pad - B), (0, D_pad - D)))
    if class_pad:
        xn = xn.at[:, D].set(1.0)
    xn = xn.astype(jnp.bfloat16)
    # w: normalize, fold in `scale`, pad; padded class rows get -1e9 in the
    # mask-carrier column so their logits come out of the matmul pre-masked.
    wn = scale * _rsqrt_normalize(w.astype(jnp.float32))
    wn = jnp.pad(wn, ((0, C_pad - C), (0, D_pad - D)))
    if class_pad:
        wn = wn.at[C:, D].set(_PAD_LOGIT)
    wn = wn.astype(jnp.bfloat16)
    label_p = jnp.pad(label.astype(jnp.int32).reshape(B, 1),
                      ((0, B_pad - B), (0, 0)))

    kernel = functools.partial(
        _aamsoftmax_kernel,
        cos_m=math.cos(margin), sin_m=math.sin(margin),
        th=math.cos(math.pi - margin),
        mm=math.sin(math.pi - margin) * margin,
        scale=float(scale), inv_scale=1.0 / float(scale),
        easy_margin=easy_margin, c_tile=c_tile, w_resident=resident)

    if resident:
        # constant block index => wn is DMA'd from HBM exactly once.
        w_spec = pl.BlockSpec((C_pad, D_pad), lambda b, c: (0, 0))
    else:
        w_spec = pl.BlockSpec((c_tile, D_pad), lambda b, c: (c, 0))
        if depth > 2:
            try:
                w_spec = pl.BlockSpec((c_tile, D_pad), lambda b, c: (c, 0),
                                      pipeline_mode=pl.Buffered(depth))
            except TypeError:
                pass  # older jax: keep default double-buffering

    grid = (B_pad // b_tile, C_pad // c_tile)
    n_b_tiles = grid[0]
    w_reads = 1 if resident else n_b_tiles
    cost = pl.CostEstimate(
        flops=2 * B_pad * C_pad * D_pad,
        transcendentals=B_pad * C_pad + 2 * B_pad * grid[1],
        bytes_accessed=(B_pad * D_pad * 2            # xn (bf16, read once)
                        + w_reads * C_pad * D_pad * 2  # wn, per actual layout
                        + B_pad * 4                  # labels
                        + 2 * B_pad * 4))            # loss + correct

    loss_per_ex, correct = pl.pallas_call(
        kernel,
        out_shape=(jax.ShapeDtypeStruct((B_pad, 1), jnp.float32),
                   jax.ShapeDtypeStruct((B_pad, 1), jnp.float32)),
        grid_spec=pltpu.PrefetchScalarGridSpec(
            num_scalar_prefetch=0,
            grid=grid,
            in_specs=[
                pl.BlockSpec((b_tile, D_pad), lambda b, c: (b, 0)),
                w_spec,
                pl.BlockSpec((b_tile, 1), lambda b, c: (b, 0)),
            ],
            out_specs=(
                pl.BlockSpec((b_tile, 1), lambda b, c: (b, 0)),
                pl.BlockSpec((b_tile, 1), lambda b, c: (b, 0)),
            ),
            scratch_shapes=[
                pltpu.VMEM((b_tile, 1), jnp.float32),   # running max
                pltpu.VMEM((b_tile, 1), jnp.float32),   # running sum-exp
                pltpu.VMEM((b_tile, 1), jnp.float32),   # target logit
            ]),
        compiler_params=pltpu.CompilerParams(
            dimension_semantics=("parallel", "arbitrary"),
            vmem_limit_bytes=vmem_limit),
        cost_estimate=cost,
    )(xn, wn, label_p)

    loss = jnp.sum(loss_per_ex[:B, 0]) / B
    prec = 100.0 * jnp.sum(correct[:B, 0]) / B
    return loss, prec


def _reference(x, w, label, margin=0.2, scale=30.0, easy_margin=False):
    # Pure-JAX reference mirroring the kernel's numerics (bf16 normalized
    # operands with scale folded into w, f32 accumulation).  Matches the
    # PyTorch module up to bf16/f32 mixed precision.
    cos_m, sin_m = math.cos(margin), math.sin(margin)
    th = math.cos(math.pi - margin)
    mm = math.sin(math.pi - margin) * margin
    xn = _rsqrt_normalize(x.astype(jnp.float32)).astype(jnp.bfloat16)
    wn = (scale * _rsqrt_normalize(w.astype(jnp.float32))).astype(jnp.bfloat16)
    s_cos = jnp.dot(xn, wn.T, preferred_element_type=jnp.float32)
    tgt_s = jnp.take_along_axis(s_cos, label[:, None], axis=1)
    tgt_cos = tgt_s / scale
    sine = jnp.sqrt(jnp.clip(1.0 - tgt_cos * tgt_cos, 0.0, 1.0))
    phi = tgt_cos * cos_m - sine * sin_m
    phi = jnp.where(tgt_cos > 0, phi, tgt_cos) if easy_margin \
        else jnp.where(tgt_cos - th > 0, phi, tgt_cos - mm)
    one_hot = jax.nn.one_hot(label, s_cos.shape[1], dtype=jnp.float32)
    out = one_hot * (scale * phi) + (1.0 - one_hot) * s_cos
    logp = jax.nn.log_softmax(out, axis=-1)
    loss = -jnp.mean(jnp.sum(one_hot * logp, axis=-1))
    tgt_out = jnp.take_along_axis(out, label[:, None], axis=1)[:, 0]
    prec = 100.0 * jnp.mean((tgt_out >= jnp.max(out, axis=-1)).astype(jnp.float32))
    return loss, prec


if __name__ == "__main__":
    key = jax.random.PRNGKey(0)
    B, n_out, n_classes = 8, 32, 64

    kx, kw, kl = jax.random.split(key, 3)
    x = jax.random.normal(kx, (B, n_out), dtype=jnp.float32)
    # xavier_normal_ init: std = gain * sqrt(2 / (fan_in + fan_out))
    std = math.sqrt(2.0 / (n_classes + n_out))
    w = std * jax.random.normal(kw, (n_classes, n_out), dtype=jnp.float32)
    label = jax.random.randint(kl, (B,), 0, n_classes, dtype=jnp.int32)

    loss, prec = aamsoftmax_forward(x, w, label, margin=0.2, scale=30.0)
    jax.block_until_ready((loss, prec))

    ref_loss, ref_prec = _reference(x, w, label, margin=0.2, scale=30.0)
    assert abs(float(loss) - float(ref_loss)) < 2e-3, (float(loss), float(ref_loss))
    assert abs(float(prec) - float(ref_prec)) < 1e-3, (float(prec), float(ref_prec))

    print("KERNEL_OK")
</pallas_src>

<mosaic_0001>
module attributes {stable_mosaic.version = 11 : i64} {
  func.func @_aamsoftmax_kernel(%arg0: i32, %arg1: i32, %arg2: memref<8x128xbf16, #tpu.memory_space<vmem>>, %arg3: memref<128x128xbf16, #tpu.memory_space<vmem>>, %arg4: memref<8x1xi32, #tpu.memory_space<vmem>>, %arg5: memref<8x1xf32, #tpu.memory_space<vmem>>, %arg6: memref<8x1xf32, #tpu.memory_space<vmem>>, %arg7: memref<8x1xf32, #tpu.memory_space<vmem>>, %arg8: memref<8x1xf32, #tpu.memory_space<vmem>>, %arg9: memref<8x1xf32, #tpu.memory_space<vmem>>) attributes {dimension_semantics = [#tpu.dimension_semantics<parallel>, #tpu.dimension_semantics<arbitrary>], iteration_bounds = array<i64: 1, 1>, scalar_prefetch = 0 : i64, scratch_operands = 3 : i64, tpu.core_type = #tpu.core_type<tc>, window_params = [{transform_indices = @transform_0, window_bounds = array<i64: 8, 128>}, {pipeline_mode = #tpu.pipeline_mode<synchronous>, transform_indices = @transform_1, window_bounds = array<i64: 128, 128>}, {transform_indices = @transform_2, window_bounds = array<i64: 8, 1>}, {transform_indices = @transform_3, window_bounds = array<i64: 8, 1>}, {transform_indices = @transform_4, window_bounds = array<i64: 8, 1>}]} {
    %c0_i32 = arith.constant 0 : i32
    %0 = arith.cmpi eq, %arg1, %c0_i32 : i32
    %1 = arith.extui %0 : i1 to i32
    %c0_i32_0 = arith.constant 0 : i32
    %2 = arith.cmpi ne, %1, %c0_i32_0 : i32
    scf.if %2 {
      %cst_36 = arith.constant -1.000000e+30 : f32
      %77 = vector.broadcast %cst_36 : f32 to vector<8x1xf32>
      %c0_37 = arith.constant 0 : index
      %c0_38 = arith.constant 0 : index
      %78 = vector.load %arg7[%c0_37, %c0_38] : memref<8x1xf32, #tpu.memory_space<vmem>>, vector<8x1xf32>
      tpu.vector_store %arg7[%c0_37, %c0_38], %77 {strides = array<i32>} : memref<8x1xf32, #tpu.memory_space<vmem>>, vector<8x1xf32>,
      %cst_39 = arith.constant 0.000000e+00 : f32
      %79 = vector.broadcast %cst_39 : f32 to vector<8x1xf32>
      %c0_40 = arith.constant 0 : index
      %c0_41 = arith.constant 0 : index
      %80 = vector.load %arg8[%c0_40, %c0_41] : memref<8x1xf32, #tpu.memory_space<vmem>>, vector<8x1xf32>
      tpu.vector_store %arg8[%c0_40, %c0_41], %79 {strides = array<i32>} : memref<8x1xf32, #tpu.memory_space<vmem>>, vector<8x1xf32>,
      %cst_42 = arith.constant 0.000000e+00 : f32
      %81 = vector.broadcast %cst_42 : f32 to vector<8x1xf32>
      %c0_43 = arith.constant 0 : index
      %c0_44 = arith.constant 0 : index
      %82 = vector.load %arg9[%c0_43, %c0_44] : memref<8x1xf32, #tpu.memory_space<vmem>>, vector<8x1xf32>
      tpu.vector_store %arg9[%c0_43, %c0_44], %81 {strides = array<i32>} : memref<8x1xf32, #tpu.memory_space<vmem>>, vector<8x1xf32>,
    } else {
    }
    %c0 = arith.constant 0 : index
    %c0_1 = arith.constant 0 : index
    %3 = vector.load %arg4[%c0, %c0_1] : memref<8x1xi32, #tpu.memory_space<vmem>>, vector<8x1xi32>
    %c0_2 = arith.constant 0 : index
    %c0_3 = arith.constant 0 : index
    %4 = vector.load %arg2[%c0_2, %c0_3] : memref<8x128xbf16, #tpu.memory_space<vmem>>, vector<8x128xbf16>
    %c128_i32 = arith.constant 128 : i32
    %5 = arith.muli %arg1, %c128_i32 : i32
    %6 = tpu.assume_multiple %5, 128 : i32
    %7 = arith.index_cast %6 : i32 to index
    %c0_4 = arith.constant 0 : index
    %8 = vector.load %arg3[%7, %c0_4] : memref<128x128xbf16, #tpu.memory_space<vmem>>, vector<128x128xbf16>
    %cst = arith.constant dense<0.000000e+00> : vector<8x128xf32>
    %9 = tpu.matmul %4, %8, %cst {dimension_numbers = #tpu.dot_dimension_numbers<[1], [1], [0], [0], [0, 0, 1, 0], [], []>} : vector<8x128xbf16>, vector<128x128xbf16>, vector<8x128xf32> -> vector<8x128xf32>
    %c128_i32_5 = arith.constant 128 : i32
    %10 = arith.muli %arg1, %c128_i32_5 : i32
    %11 = tpu.iota {dimensions = array<i32: 1>} : vector<8x128xi32>
    %12 = vector.broadcast %10 : i32 to vector<8x128xi32>
    %13 = arith.addi %12, %11 : vector<8x128xi32>
    %14 = vector.broadcast %3 : vector<8x1xi32> to vector<8x128xi32>
    %15 = arith.cmpi eq, %13, %14 : vector<8x128xi32>
    %cst_6 = arith.constant 0.000000e+00 : f32
    %16 = vector.broadcast %cst_6 : f32 to vector<8x128xf32>
    %17 = arith.select %15, %9, %16 : vector<8x128xi1>, vector<8x128xf32>
    %cst_7 = arith.constant dense<0.000000e+00> : vector<8xf32>
    %18 = vector.multi_reduction <add>, %17, %cst_7 [1] : vector<8x128xf32> to vector<8xf32>
    %19 = vector.shape_cast %18 : vector<8xf32> to vector<8x1xf32>
    %cst_8 = arith.constant 0.0333333351 : f32
    %20 = vector.broadcast %cst_8 : f32 to vector<8x1xf32>
    %21 = arith.mulf %19, %20 : vector<8x1xf32>
    %22 = arith.mulf %21, %21 : vector<8x1xf32>
    %cst_9 = arith.constant 1.000000e+00 : f32
    %23 = vector.broadcast %cst_9 : f32 to vector<8x1xf32>
    %24 = arith.subf %23, %22 : vector<8x1xf32>
    %cst_10 = arith.constant 0.000000e+00 : f32
    %cst_11 = arith.constant 1.000000e+00 : f32
    %25 = vector.broadcast %cst_10 : f32 to vector<8x1xf32>
    %26 = arith.maximumf %25, %24 : vector<8x1xf32>
    %27 = vector.broadcast %cst_11 : f32 to vector<8x1xf32>
    %28 = arith.minimumf %27, %26 : vector<8x1xf32>
    %29 = math.sqrt %28 : vector<8x1xf32>
    %cst_12 = arith.constant 0.980066597 : f32
    %30 = vector.broadcast %cst_12 : f32 to vector<8x1xf32>
    %31 = arith.mulf %21, %30 : vector<8x1xf32>
    %cst_13 = arith.constant 0.198669329 : f32
    %32 = vector.broadcast %cst_13 : f32 to vector<8x1xf32>
    %33 = arith.mulf %29, %32 : vector<8x1xf32>
    %34 = arith.subf %31, %33 : vector<8x1xf32>
    %cst_14 = arith.constant -0.980066597 : f32
    %35 = vector.broadcast %cst_14 : f32 to vector<8x1xf32>
    %36 = arith.subf %21, %35 : vector<8x1xf32>
    %cst_15 = arith.constant 0.000000e+00 : f32
    %37 = vector.broadcast %cst_15 : f32 to vector<8x1xf32>
    %38 = arith.cmpf ogt, %36, %37 : vector<8x1xf32>
    %cst_16 = arith.constant 0.0397338644 : f32
    %39 = vector.broadcast %cst_16 : f32 to vector<8x1xf32>
    %40 = arith.subf %21, %39 : vector<8x1xf32>
    %41 = arith.select %38, %34, %40 : vector<8x1xi1>, vector<8x1xf32>
    %cst_17 = arith.constant 3.000000e+01 : f32
    %42 = vector.broadcast %cst_17 : f32 to vector<8x1xf32>
    %43 = arith.mulf %42, %41 : vector<8x1xf32>
    %c128_i32_18 = arith.constant 128 : i32
    %44 = arith.muli %arg1, %c128_i32_18 : i32
    %45 = vector.broadcast %44 : i32 to vector<8x1xi32>
    %46 = arith.cmpi sge, %3, %45 : vector<8x1xi32>
    %c1_i32 = arith.constant 1 : i32
    %47 = arith.addi %arg1, %c1_i32 : i32
    %c128_i32_19 = arith.constant 128 : i32
    %48 = arith.muli %47, %c128_i32_19 : i32
    %49 = vector.broadcast %48 : i32 to vector<8x1xi32>
    %50 = arith.cmpi slt, %3, %49 : vector<8x1xi32>
    %51 = arith.andi %46, %50 : vector<8x1xi1>
    %52 = vector.shape_cast %43 : vector<8x1xf32> to vector<8x1xf32>
    %53 = vector.broadcast %52 : vector<8x1xf32> to vector<8x128xf32>
    %54 = arith.select %15, %53, %9 : vector<8x128xi1>, vector<8x128xf32>
    %c0_20 = arith.constant 0 : index
    %c0_21 = arith.constant 0 : index
    %55 = vector.load %arg7[%c0_20, %c0_21] : memref<8x1xf32, #tpu.memory_space<vmem>>, vector<8x1xf32>
    %cst_22 = arith.constant dense<0xFF800000> : vector<8xf32>
    %56 = vector.multi_reduction <maximumf>, %54, %cst_22 [1] : vector<8x128xf32> to vector<8xf32>
    %57 = vector.shape_cast %56 : vector<8xf32> to vector<8x1xf32>
    %58 = arith.maximumf %55, %57 : vector<8x1xf32>
    %59 = arith.subf %55, %58 : vector<8x1xf32>
    %60 = math.exp %59 : vector<8x1xf32>
    %61 = vector.broadcast %58 : vector<8x1xf32> to vector<8x128xf32>
    %62 = arith.subf %54, %61 : vector<8x128xf32>
    %63 = math.exp %62 : vector<8x128xf32>
    %cst_23 = arith.constant dense<0.000000e+00> : vector<8xf32>
    %64 = vector.multi_reduction <add>, %63, %cst_23 [1] : vector<8x128xf32> to vector<8xf32>
    %65 = vector.shape_cast %64 : vector<8xf32> to vector<8x1xf32>
    %c0_24 = arith.constant 0 : index
    %c0_25 = arith.constant 0 : index
    %66 = vector.load %arg8[%c0_24, %c0_25] : memref<8x1xf32, #tpu.memory_space<vmem>>, vector<8x1xf32>
    %67 = arith.mulf %60, %66 : vector<8x1xf32>
    %68 = arith.addf %67, %65 : vector<8x1xf32>
    %c0_26 = arith.constant 0 : index
    %c0_27 = arith.constant 0 : index
    %69 = vector.load %arg8[%c0_26, %c0_27] : memref<8x1xf32, #tpu.memory_space<vmem>>, vector<8x1xf32>
    tpu.vector_store %arg8[%c0_26, %c0_27], %68 {strides = array<i32>} : memref<8x1xf32, #tpu.memory_space<vmem>>, vector<8x1xf32>,
    %c0_28 = arith.constant 0 : index
    %c0_29 = arith.constant 0 : index
    %70 = vector.load %arg7[%c0_28, %c0_29] : memref<8x1xf32, #tpu.memory_space<vmem>>, vector<8x1xf32>
    tpu.vector_store %arg7[%c0_28, %c0_29], %58 {strides = array<i32>} : memref<8x1xf32, #tpu.memory_space<vmem>>, vector<8x1xf32>,
    %c0_30 = arith.constant 0 : index
    %c0_31 = arith.constant 0 : index
    %71 = vector.load %arg9[%c0_30, %c0_31] : memref<8x1xf32, #tpu.memory_space<vmem>>, vector<8x1xf32>
    %72 = arith.select %51, %43, %71 : vector<8x1xi1>, vector<8x1xf32>
    %c0_32 = arith.constant 0 : index
    %c0_33 = arith.constant 0 : index
    %73 = vector.load %arg9[%c0_32, %c0_33] : memref<8x1xf32, #tpu.memory_space<vmem>>, vector<8x1xf32>
    tpu.vector_store %arg9[%c0_32, %c0_33], %72 {strides = array<i32>} : memref<8x1xf32, #tpu.memory_space<vmem>>, vector<8x1xf32>,
    %c0_i32_34 = arith.constant 0 : i32
    %74 = arith.cmpi eq, %arg1, %c0_i32_34 : i32
    %75 = arith.extui %74 : i1 to i32
    %c0_i32_35 = arith.constant 0 : i32
    %76 = arith.cmpi ne, %75, %c0_i32_35 : i32
    scf.if %76 {
      %c0_36 = arith.constant 0 : index
      %c0_37 = arith.constant 0 : index
      %77 = vector.load %arg7[%c0_36, %c0_37] : memref<8x1xf32, #tpu.memory_space<vmem>>, vector<8x1xf32>
      %c0_38 = arith.constant 0 : index
      %c0_39 = arith.constant 0 : index
      %78 = vector.load %arg8[%c0_38, %c0_39] : memref<8x1xf32, #tpu.memory_space<vmem>>, vector<8x1xf32>
      %79 = math.log %78 : vector<8x1xf32>
      %80 = arith.addf %77, %79 : vector<8x1xf32>
      %c0_40 = arith.constant 0 : index
      %c0_41 = arith.constant 0 : index
      %81 = vector.load %arg9[%c0_40, %c0_41] : memref<8x1xf32, #tpu.memory_space<vmem>>, vector<8x1xf32>
      %82 = arith.subf %80, %81 : vector<8x1xf32>
      %c0_42 = arith.constant 0 : index
      %c0_43 = arith.constant 0 : index
      %83 = vector.load %arg5[%c0_42, %c0_43] : memref<8x1xf32, #tpu.memory_space<vmem>>, vector<8x1xf32>
      tpu.vector_store %arg5[%c0_42, %c0_43], %82 {strides = array<i32>} : memref<8x1xf32, #tpu.memory_space<vmem>>, vector<8x1xf32>,
      %c0_44 = arith.constant 0 : index
      %c0_45 = arith.constant 0 : index
      %84 = vector.load %arg9[%c0_44, %c0_45] : memref<8x1xf32, #tpu.memory_space<vmem>>, vector<8x1xf32>
      %c0_46 = arith.constant 0 : index
      %c0_47 = arith.constant 0 : index
      %85 = vector.load %arg7[%c0_46, %c0_47] : memref<8x1xf32, #tpu.memory_space<vmem>>, vector<8x1xf32>
      %86 = arith.cmpf oge, %84, %85 : vector<8x1xf32>
      %87 = arith.extui %86 : vector<8x1xi1> to vector<8x1xi32>
      %88 = arith.sitofp %87 : vector<8x1xi32> to vector<8x1xf32>
      %c0_48 = arith.constant 0 : index
      %c0_49 = arith.constant 0 : index
      %89 = vector.load %arg6[%c0_48, %c0_49] : memref<8x1xf32, #tpu.memory_space<vmem>>, vector<8x1xf32>
      tpu.vector_store %arg6[%c0_48, %c0_49], %88 {strides = array<i32>} : memref<8x1xf32, #tpu.memory_space<vmem>>, vector<8x1xf32>,
    } else {
    }
    return
  }
  func.func @transform_0(%arg0: i32, %arg1: i32) -> (i32, i32) {
    %c0_i32 = arith.constant 0 : i32
    %c0_i32_0 = arith.constant 0 : i32
    return %arg0, %c0_i32 : i32, i32
  }
  func.func @transform_1(%arg0: i32, %arg1: i32) -> (i32, i32) {
    %c0_i32 = arith.constant 0 : i32
    %c0_i32_0 = arith.constant 0 : i32
    %c0_i32_1 = arith.constant 0 : i32
    return %c0_i32, %c0_i32_0 : i32, i32
  }
  func.func @transform_2(%arg0: i32, %arg1: i32) -> (i32, i32) {
    %c0_i32 = arith.constant 0 : i32
    %c0_i32_0 = arith.constant 0 : i32
    return %arg0, %c0_i32 : i32, i32
  }
  func.func @transform_3(%arg0: i32, %arg1: i32) -> (i32, i32) {
    %c0_i32 = arith.constant 0 : i32
    %c0_i32_0 = arith.constant 0 : i32
    return %arg0, %c0_i32 : i32, i32
  }
  func.func @transform_4(%arg0: i32, %arg1: i32) -> (i32, i32) {
    %c0_i32 = arith.constant 0 : i32
    %c0_i32_0 = arith.constant 0 : i32
    return %arg0, %c0_i32 : i32, i32
  }
}

</mosaic_0001>

<bundles_post_ra>
// kernel: tpu_custom_call.1
= control target key start
LH: loop header
LB: loop body
LE: loop exit
PB: predicated region body
PF: predicated region fallthrough
CT: control target
= control target key end

     0   :  { %10 = vsyncpa [#allocation6], 0  ;;  %s331_s15 = smov [#allocation5]   ;;  %s409_s0 = inlined_call_operand.vmem [shape: bf16[8,128], index: 0, kind: input, shape index: {}]   ;;  %s410_s1 = inlined_call_operand.hbm [shape: bf16[128,128], index: 1, kind: input, shape index: {}]   ;;  %s411_s2 = inlined_call_operand.vmem [shape: s32[8,1], index: 2, kind: input, shape index: {}]   ;;  %s412_s3 = inlined_call_operand.vmem [shape: f32[8,1], index: 3, kind: output, shape index: {0}]   ;;  %s413_s4 = inlined_call_operand.vmem [shape: f32[8,1], index: 4, kind: output, shape index: {1}]  }
   0x1   :  { %s18_s16 = sshll.u32 %s331_s15, 4  ;;  %s307_s19 = scalar_lea.hbm %s410_s1, 1024  ;;  %s19_s16 = int_to_ptr.vmem [resolvable:$true] %s18_s16 }
   0x2   :  { %p308_p0 = scmp.ne.s32.totalorder %s410_s1, %s307_s19  ;;  %p311_p1 = scmp.lt.u32.totalorder %s307_s19, %s410_s1 }
   0x4   :  { %p313_p2 = pnand %p311_p1, %p308_p0 }
   0x6   :  { %316 = shalt.err (!%p313_p2)
}
   0x7   :  { %s317_s24 = scalar_lea.vmem %s19_s16, 1024  ;;  %p322_p4 = scmp.lt.s32.totalorder %s19_s16, %s19_s16 }
   0x8   :  { %p318_p3 = scmp.ne.s32.totalorder %s19_s16, %s317_s24  ;;  %p323_p5 = scmp.lt.s32.totalorder %s317_s24, %s317_s24 }
   0xa   :  { %p324_p6 = por %p323_p5, %p322_p4 }
   0xc   :  { %p325_p7 = pnand %p324_p6, %p318_p3 }
   0xe   :  { %328 = shalt.err (!%p325_p7)
}
   0xf   :  { %s332_s25 = smov 64   ;;  %s333_s26 = smov 4  }
  0x10   :  { %24 = dma.hbm_to_vmem [thread:$0]  %s410_s1, 1024, %s19_s16, [#allocation6], %s332_s25, %s332_s25, %s333_s26  }
  0x11   :  { %329 = dma.done.wait [#allocation6], 1024  }
  0x12   :  { %330 = vsyncadd [#allocation6], 4294966272  ;;  %v334_v0 = vmov 0.0   ;;  %vm335_vm0 = vmmov 0   ;;  %v336_v1 = vmov 0   ;;  %v291_v2 = vld [vmem:[#allocation5] sm:$0xff]   ;;  %v150_v12 = vlaneseq }
  0x13   :  { %262 = vmatprep.subr.bf16.mxu0 %v334_v0  ;;  %278 = vmatprep.mubr.msk.bf16.mxu0 %vm335_vm0, %v334_v0  ;;  %v292_v3 = vld [vmem:[#allocation5 + $0x8] sm:$0xff]   ;;  %v293_v5 = vld [vmem:[#allocation5 + $0x10] sm:$0xff]   ;;  %v294_v6 = vld [vmem:[#allocation5 + $0x18] sm:$0xff]   ;;  %vm35_vm2 = vcmask 7168   ;;  %v337_v20 = vmov -1e+30  }
  0x14   :  { %289 = vset.pattern.permute.xlu0 %v336_v1  ;;  %290 = vset.pattern.permute.xlu1 %v336_v1  ;;  %v39_v4 = vld [vmem:[%s411_s2] sm:$0xff]  ;;  %v295_v7 = vld [vmem:[#allocation5 + $0x20] sm:$0xff]   ;;  %v297_v9 = vld [vmem:[#allocation5 + $0x30] sm:$0xff]   ;;  %v151_v13 = vand.u32 127, %v150_v12  ;;  %38 = vst.msk [vmem:[#allocation4] sm:$0xff] %vm35_vm2, %v334_v0 }
  0x15   :  { %263 = vmatpush3.bf16.xpose.msra.mxu0 %v291_v2  ;;  %155 = vperm.xlu0 %289, %v39_v4   ;;  %v296_v8 = vld [vmem:[#allocation5 + $0x28] sm:$0xff]   ;;  %v298_v10 = vld [vmem:[#allocation5 + $0x38] sm:$0xff]   ;;  %37 = vst.msk [vmem:[#allocation3] sm:$0xff] %vm35_vm2, %v334_v0  ;;  %36 = vst.msk [vmem:[#allocation2] sm:$0xff] %vm35_vm2, %v337_v20  ;;  %vm181_vm5 = vcmp.ge.s32.totalorder %v39_v4, 0  ;;  %vm185_vm6 = vcmp.lt.s32.totalorder %v39_v4, 128 }
  0x16   :  { %264 = vmatprep.subr.bf16.mxu0 %v334_v0  ;;  %v40_v11 = vld [vmem:[%s409_s0] sm:$0xf]  ;;  %vm186_vm8 = vmand %vm181_vm5, %vm185_vm6 }
  0x1b   :  { %v211_v38 = vld [vmem:[#allocation4] sm:$0xff] }
  0x1c   :  { %v188_v42 = vld [vmem:[#allocation2] sm:$0xff]  ;;  %v205_v55 = vld [vmem:[#allocation3] sm:$0xff] }
  0x1d   :  { %265 = vmatpush3.bf16.xpose.msra.mxu0 %v292_v3 }
  0x1e   :  { %266 = vmatprep.subr.bf16.mxu0 %v334_v0 }
  0x25   :  { %267 = vmatpush3.bf16.xpose.msra.mxu0 %v293_v5 }
  0x26   :  { %268 = vmatprep.subr.bf16.mxu0 %v334_v0 }
  0x2d   :  { %269 = vmatpush3.bf16.xpose.msra.mxu0 %v294_v6 }
  0x2e   :  { %270 = vmatprep.subr.bf16.mxu0 %v334_v0 }
  0x35   :  { %271 = vmatpush3.bf16.xpose.msra.mxu0 %v295_v7 }
  0x36   :  { %272 = vmatprep.subr.bf16.mxu0 %v334_v0 }
  0x3d   :  { %273 = vmatpush3.bf16.xpose.msra.mxu0 %v296_v8 }
  0x3e   :  { %274 = vmatprep.subr.bf16.mxu0 %v334_v0 }
  0x45   :  { %275 = vmatpush3.bf16.xpose.msra.mxu0 %v297_v9 }
  0x46   :  { %276 = vmatprep.subr.bf16.mxu0 %v334_v0 }
  0x4d   :  { %277 = vmatpush3.bf16.xpose.msra.mxu0 %v298_v10 }
  0x54   :  { %279 = vmatmul.mubr.bf16.vlgmr.msra.gmra.mrb[0].mxu0 %v40_v11 }
  0x94   :  { %v156_v14 = vpop.permute.xlu0 %155 }
  0x95   :  { %vm157_vm1 = vcmp.eq.s32.totalorder %v151_v13, %v156_v14 }
 0x127   :  { %v144_v15 = vpop.f32.mrb[0].mxu0 }
 0x128   :  { %v280_v16 = vpop.f32.mrb[1].mxu0  ;;  %v158_v17 = vsel %vm157_vm1, %v144_v15, 0.0 }
 0x129   :  { %v147_v18 = vpop.f32.mrb[2].mxu0  ;;  %159 = vadd.xlane.f32.xlu0 %v158_v17 }
 0x12a   :  { %v281_v19 = vpop.f32.mrb[3].mxu0 }
 0x1b6   :  { %v160_v21 = vpop.xlane.xlu0 %159 }
 0x1b7   :  { %v161_v22 = vmul.f32 0.033333335, %v160_v21 }
 0x1b9   :  { %v162_v23 = vmul.f32 %v161_v22, %v161_v22  ;;  %v250_v31 = vadd.f32 0.9800666, %v161_v22  ;;  %v173_v33 = vmul.f32 0.9800666, %v161_v22  ;;  %v251_v35 = vadd.f32 -0.039733864, %v161_v22 }
 0x1bb   :  { %v163_v24 = vsub.f32 1.0, %v162_v23  ;;  %vm177_vm7 = vcmp.gt.f32.partialorder %v250_v31, 0.0 }
 0x1bd   :  { %v164_v25 = vmax.f32 %v163_v24, 0.0 }
 0x1bf   :  { %v165_v26 = vmin.f32 %v164_v25, 1.0 }
 0x1c1   :  { %299 = vrsqrt.f32 %v165_v26  ;;  %vm168_vm3 = vcmp.eq.f32.partialorder %v165_v26, inf  ;;  %v171_v29 = vand.u32 2147483648, %v165_v26  ;;  %vm170_vm4 = vcmp.eq.f32.partialorder %v165_v26, 0.0 }
 0x1cb   :  { %v300_v27 = vpop.eup %299 }
 0x1cc   :  { %v167_v28 = vmul.f32 %v300_v27, %v165_v26 }
 0x1ce   :  { %v169_v30 = vsel %vm168_vm3, %v165_v26, %v167_v28 }
 0x1cf   :  { %v172_v32 = vsel %vm170_vm4, %v171_v29, %v169_v30 }
 0x1d0   :  { %v174_v34 = vmul.f32 0.19866933, %v172_v32 }
 0x1d2   :  { %v175_v36 = vsub.f32 %v173_v33, %v174_v34 }
 0x1d4   :  { %v179_v37 = vsel %vm177_vm7, %v175_v36, %v251_v35 }
 0x1d5   :  { %v180_v39 = vmul.f32 30.0, %v179_v37 }
 0x1d7   :  { %v187_v40 = vsel %vm157_vm1, %v180_v39, %v144_v15  ;;  %v212_v41 = vsel %vm186_vm8, %v180_v39, %v211_v38 }
 0x1d8   :  { %189 = vmax.xlane.f32.xlu1 %v187_v40  ;;  %213 = vst.msk [vmem:[#allocation4] sm:$0xff] %vm35_vm2, %v212_v41 }
 0x1df   :  { %v222_v46 = vld [vmem:[#allocation4] sm:$0xff] }
 0x265   :  { %v190_v43 = vpop.xlane.xlu1 %189 }
 0x266   :  { %v191_v44 = vmax.f32 %v188_v42, %v190_v43 }
 0x268   :  { %v192_v45 = vsub.f32 %v188_v42, %v191_v44  ;;  %210 = vst.msk [vmem:[#allocation2] sm:$0xff] %vm35_vm2, %v191_v44  ;;  %197 = vperm.xlu1 %290, %v191_v44  }
 0x26a   :  { %v193_v53 = vmul.f32 1.442695, %v192_v45 }
 0x26f   :  { %v217_v47 = vld [vmem:[#allocation2] sm:$0xff] }
 0x270   :  { %vm227_vm9 = vcmp.ge.f32.partialorder %v222_v46, %v217_v47 }
 0x271   :  { %v252_v48 = vsel %vm227_vm9, 1.0, %v334_v0 }
 0x272   :  { %230 = vst.msk [vmem:[%s413_s4] sm:$0xff] %vm35_vm2, %v252_v48 }
 0x2e7   :  { %v198_v49 = vpop.permute.xlu1 %197 }
 0x2e8   :  { %v200_v50 = vsub.f32 %v187_v40, %v198_v49 }
 0x2ea   :  { %v201_v51 = vmul.f32 1.442695, %v200_v50 }
 0x2ec   :  { %301 = vpow2.f32 %v201_v51 }
 0x2ed   :  { %303 = vpow2.f32 %v193_v53 }
 0x2f6   :  { %v302_v52 = vpop.eup %301 }
 0x2f7   :  { %203 = vadd.xlane.f32.xlu1 %v302_v52  ;;  %v304_v54 = vpop.eup %303 }
 0x2f8   :  { %v206_v56 = vmul.f32 %v304_v54, %v205_v55 }
 0x384   :  { %v204_v57 = vpop.xlane.xlu1 %203 }
 0x385   :  { %v207_v58 = vadd.f32 %v206_v56, %v204_v57 }
 0x387   :  { %209 = vst.msk [vmem:[#allocation3] sm:$0xff] %vm35_vm2, %v207_v58 }
 0x38e   :  { %v218_v59 = vld [vmem:[#allocation3] sm:$0xff] }
 0x38f   :  { %305 = vlog2.f32 %v218_v59 }
 0x399   :  { %v306_v60 = vpop.eup %305 }
 0x39a   :  { %v220_v61 = vmul.f32 0.6931472, %v306_v60 }
 0x39c   :  { %v221_v62 = vadd.f32 %v220_v61, %v217_v47 }
 0x39e   :  { %v223_v63 = vsub.f32 %v221_v62, %v222_v46 }
 0x3a0   :  { %224 = vst.msk [vmem:[%s412_s3] sm:$0xff] %vm35_vm2, %v223_v63 }
 0x3a1   :  { %239 = vsyncpa [#allocation6], 1 }

</bundles_post_ra>
